<compile_context>
chip_gen: v7x
topology: tpu7x:2x2x1
jax: 0.10.0
libtpu: 0.0.40
codegen_flags: <defaults>
</compile_context>

<pallas_src>
import math

import jax
import jax.numpy as jnp
from jax.experimental import pallas as pl
from jax.experimental.pallas import tpu as pltpu


def _round_up(a: int, b: int) -> int:
    return ((a + b - 1) // b) * b


def teacher_kernel(vrep_ref, usel_ref, x_ref, o_ref):
    # Flattened, pre-scaled S as an (L*D, 1) column:
    #   s_col[i*D + j, 0] = scale * sum_m V[i, m] * U[m, j]  (= scale * S[i, j])
    s_col = jnp.sum(vrep_ref[...] * usel_ref[...], axis=1, keepdims=True)

    # out[n] = sum_k x2d[n, k] * s_col[k]  -- (TN, L*D) @ (L*D, 1) on the MXU.
    o_ref[...] = jnp.dot(
        x_ref[...], s_col, preferred_element_type=jnp.float32
    ).astype(o_ref.dtype)


def network_teacher_forward(x, U, V, *, block_rows: int = 2048):
    """x: (N, L, D), U: (M, D), V: (L, M)  ->  (N,) float32."""
    N, L, D = x.shape
    M, D_u = U.shape
    L_v, M_v = V.shape
    assert (D_u, L_v, M_v) == (D, L, M)
    LD = L * D
    scale = 1.0 / (math.sqrt(M) * math.sqrt(LD))

    # ---- layout plumbing in the wrapper (no batch-dependent compute) ----
    x2d = x.reshape(N, LD).astype(jnp.float32)  # lane-dense last dim (LD = 128 here)
    # TODO(synk): optionally stream x as bfloat16 on v6e/v7x (kernel is HBM-bound on
    # x); kept f32 to exactly match the module's numerics.
    vrep = jnp.repeat(V.astype(jnp.float32), D, axis=0) * scale  # (LD, M): row i*D+j = scale*V[i, :]
    usel = jnp.tile(U.astype(jnp.float32).T, (L, 1))             # (LD, M): row i*D+j = U[:, j]

    # ---- batch tiling: multiple-of-128 row tiles, ~1 MiB per x tile by default ----
    block_rows = max(128, _round_up(block_rows, 128))
    tn = min(block_rows, _round_up(N, 128))
    n_pad = _round_up(N, tn)
    if n_pad != N:
        x2d = jnp.pad(x2d, ((0, n_pad - N), (0, 0)))
    grid = (n_pad // tn,)

    # VMEM: 2 (double buffer) * tn * LD * 4 B for x (+ tiny params/output).  At the
    # default tn=2048, LD=128 that is ~2 MiB -- far below v7x's 64 MiB physical /
    # 32 MiB scoped-default VMEM, so no vmem_limit override is needed.
    out = pl.pallas_call(
        teacher_kernel,
        out_shape=jax.ShapeDtypeStruct((n_pad, 1), jnp.float32),
        grid=grid,
        in_specs=[
            pl.BlockSpec((LD, M), lambda i: (0, 0)),   # vrep: stays resident across steps
            pl.BlockSpec((LD, M), lambda i: (0, 0)),   # usel: stays resident across steps
            pl.BlockSpec((tn, LD), lambda i: (i, 0)),  # x tile: lane-dense HBM stream
        ],
        out_specs=pl.BlockSpec((tn, 1), lambda i: (i, 0)),
        compiler_params=pltpu.CompilerParams(
            dimension_semantics=("parallel",),  # shard batch tiles across TCs (v7x)
        ),
    )(vrep, usel, x2d)

    return out[:N, 0]


def _reference(x, U, V):
    M, D = U.shape
    L = V.shape[0]
    S = V @ U
    return jnp.einsum("ij,nij->n", S, x) / math.sqrt(M) / math.sqrt(L * D)


if __name__ == "__main__":
    # Small shapes consistent with the module: batch N, D, M, L (L*D = 128).
    N, D, M, L = 4, 16, 32, 8

    key = jax.random.PRNGKey(0)
    k_u, k_v, k_x = jax.random.split(key, 3)
    U = jax.random.normal(k_u, (M, D), dtype=jnp.float32)   # fc1U
    V = jax.random.normal(k_v, (L, M), dtype=jnp.float32)   # fc1V
    x = jax.random.normal(k_x, (N, L, D), dtype=jnp.float32)

    out = jax.block_until_ready(network_teacher_forward(x, U, V))
    ref = _reference(x, U, V)
    assert out.shape == (N,)
    assert jnp.allclose(out, ref, rtol=1e-5, atol=1e-4)

    # Second check: exercises batch padding and a multi-step (grid=3) pipeline.
    N2 = 300
    x2 = jax.random.normal(jax.random.PRNGKey(1), (N2, L, D), dtype=jnp.float32)
    out2 = jax.block_until_ready(network_teacher_forward(x2, U, V, block_rows=128))
    ref2 = _reference(x2, U, V)
    assert out2.shape == (N2,)
    assert jnp.allclose(out2, ref2, rtol=1e-5, atol=1e-4)

    print("KERNEL_OK")
</pallas_src>

<mosaic_0001>
module attributes {stable_mosaic.version = 11 : i64} {
  func.func @teacher_kernel(%arg0: i32, %arg1: memref<128x32xf32, #tpu.memory_space<vmem>>, %arg2: memref<128x32xf32, #tpu.memory_space<vmem>>, %arg3: memref<128x128xf32, #tpu.memory_space<vmem>>, %arg4: memref<128x1xf32, #tpu.memory_space<vmem>>) attributes {dimension_semantics = [#tpu.dimension_semantics<parallel>], iteration_bounds = array<i64: 1>, scalar_prefetch = 0 : i64, scratch_operands = 0 : i64, tpu.core_type = #tpu.core_type<tc>, window_params = [{pipeline_mode = #tpu.pipeline_mode<synchronous>, transform_indices = @transform_0, window_bounds = array<i64: 128, 32>}, {pipeline_mode = #tpu.pipeline_mode<synchronous>, transform_indices = @transform_1, window_bounds = array<i64: 128, 32>}, {transform_indices = @transform_2, window_bounds = array<i64: 128, 128>}, {transform_indices = @transform_3, window_bounds = array<i64: 128, 1>}]} {
    %c0 = arith.constant 0 : index
    %c0_0 = arith.constant 0 : index
    %0 = vector.load %arg1[%c0, %c0_0] : memref<128x32xf32, #tpu.memory_space<vmem>>, vector<128x32xf32>
    %c0_1 = arith.constant 0 : index
    %c0_2 = arith.constant 0 : index
    %1 = vector.load %arg2[%c0_1, %c0_2] : memref<128x32xf32, #tpu.memory_space<vmem>>, vector<128x32xf32>
    %2 = arith.mulf %0, %1 : vector<128x32xf32>
    %cst = arith.constant dense<0.000000e+00> : vector<128xf32>
    %3 = vector.multi_reduction <add>, %2, %cst [1] : vector<128x32xf32> to vector<128xf32>
    %4 = vector.shape_cast %3 : vector<128xf32> to vector<128x1xf32>
    %c0_3 = arith.constant 0 : index
    %c0_4 = arith.constant 0 : index
    %5 = vector.load %arg3[%c0_3, %c0_4] : memref<128x128xf32, #tpu.memory_space<vmem>>, vector<128x128xf32>
    %cst_5 = arith.constant dense<0.000000e+00> : vector<128x1xf32>
    %6 = tpu.matmul %5, %4, %cst_5 {dimension_numbers = #tpu.dot_dimension_numbers<[1], [0], [0], [1], [0, 0, 1, 1], [], []>} : vector<128x128xf32>, vector<128x1xf32>, vector<128x1xf32> -> vector<128x1xf32>
    %c0_6 = arith.constant 0 : index
    %c0_7 = arith.constant 0 : index
    %7 = vector.load %arg4[%c0_6, %c0_7] : memref<128x1xf32, #tpu.memory_space<vmem>>, vector<128x1xf32>
    tpu.vector_store %arg4[%c0_6, %c0_7], %6 {strides = array<i32>} : memref<128x1xf32, #tpu.memory_space<vmem>>, vector<128x1xf32>,
    return
  }
  func.func @transform_0(%arg0: i32) -> (i32, i32) {
    %c0_i32 = arith.constant 0 : i32
    %c0_i32_0 = arith.constant 0 : i32
    %c0_i32_1 = arith.constant 0 : i32
    return %c0_i32, %c0_i32_0 : i32, i32
  }
  func.func @transform_1(%arg0: i32) -> (i32, i32) {
    %c0_i32 = arith.constant 0 : i32
    %c0_i32_0 = arith.constant 0 : i32
    %c0_i32_1 = arith.constant 0 : i32
    return %c0_i32, %c0_i32_0 : i32, i32
  }
  func.func @transform_2(%arg0: i32) -> (i32, i32) {
    %c0_i32 = arith.constant 0 : i32
    %c0_i32_0 = arith.constant 0 : i32
    return %arg0, %c0_i32 : i32, i32
  }
  func.func @transform_3(%arg0: i32) -> (i32, i32) {
    %c0_i32 = arith.constant 0 : i32
    %c0_i32_0 = arith.constant 0 : i32
    return %arg0, %c0_i32 : i32, i32
  }
}

</mosaic_0001>

<bundles_post_ra>
// kernel: tpu_custom_call.1
= control target key start
LH: loop header
LB: loop body
LE: loop exit
PB: predicated region body
PF: predicated region fallthrough
CT: control target
= control target key end

     0   :  { %vm62_vm0 = vcmask 261120   ;;  %vm272_vm1 = vcmask 7168   ;;  %s673_s0 = inlined_call_operand.vmem [shape: f32[128,32], index: 0, kind: input, shape index: {}]   ;;  %s674_s1 = inlined_call_operand.vmem [shape: f32[128,32], index: 1, kind: input, shape index: {}]   ;;  %s675_s2 = inlined_call_operand.vmem [shape: f32[128,128], index: 2, kind: input, shape index: {}]   ;;  %s676_s3 = inlined_call_operand.vmem [shape: f32[128,1], index: 3, kind: output, shape index: {}]  }
   0x1   :  { %v16_v0 = vld [vmem:[%s673_s0 + $0x10] sm:$0xff]  ;;  %v14_v2 = vld [vmem:[%s673_s0] sm:$0xff]  ;;  %v17_v5 = vld [vmem:[%s673_s0 + $0x18] sm:$0xff] }
   0x2   :  { %v32_v1 = vld [vmem:[%s674_s1 + $0x10] sm:$0xff]  ;;  %v30_v4 = vld [vmem:[%s674_s1] sm:$0xff]  ;;  %v33_v6 = vld [vmem:[%s674_s1 + $0x18] sm:$0xff] }
   0x3   :  { %v48_v3 = vmul.f32 %v32_v1, %v16_v0  ;;  %v46_v7 = vmul.f32 %v30_v4, %v14_v2  ;;  %v49_v8 = vmul.f32 %v33_v6, %v17_v5  ;;  %v15_v9 = vld [vmem:[%s673_s0 + $0x8] sm:$0xff]  ;;  %v18_v15 = vld [vmem:[%s673_s0 + $0x20] sm:$0xff]  ;;  %v21_v22 = vld [vmem:[%s673_s0 + $0x38] sm:$0xff] }
   0x4   :  { %v31_v10 = vld [vmem:[%s674_s1 + $0x8] sm:$0xff]  ;;  %v34_v16 = vld [vmem:[%s674_s1 + $0x20] sm:$0xff]  ;;  %v37_v23 = vld [vmem:[%s674_s1 + $0x38] sm:$0xff] }
   0x5   :  { %v19_v11 = vld [vmem:[%s673_s0 + $0x28] sm:$0xff]  ;;  %v69_v12 = vsel %vm62_vm0, %v48_v3, 0.0  ;;  %v47_v13 = vmul.f32 %v31_v10, %v15_v9  ;;  %v63_v17 = vsel %vm62_vm0, %v46_v7, 0.0  ;;  %v72_v18 = vsel %vm62_vm0, %v49_v8, 0.0  ;;  %v20_v24 = vld [vmem:[%s673_s0 + $0x30] sm:$0xff]  ;;  %v22_v32 = vld [vmem:[%s673_s0 + $0x40] sm:$0xff] }
   0x6   :  { %v35_v14 = vld [vmem:[%s674_s1 + $0x28] sm:$0xff]  ;;  %70 = vadd.xlane.f32.xlu1 %v69_v12  ;;  %64 = vadd.xlane.f32.xlu0 %v63_v17  ;;  %v50_v21 = vmul.f32 %v34_v16, %v18_v15  ;;  %v36_v25 = vld [vmem:[%s674_s1 + $0x30] sm:$0xff]  ;;  %v53_v27 = vmul.f32 %v37_v23, %v21_v22  ;;  %v38_v33 = vld [vmem:[%s674_s1 + $0x40] sm:$0xff] }
   0x7   :  { %v51_v19 = vmul.f32 %v35_v14, %v19_v11  ;;  %v66_v20 = vsel %vm62_vm0, %v47_v13, 0.0  ;;  %v52_v29 = vmul.f32 %v36_v25, %v20_v24  ;;  %v23_v30 = vld [vmem:[%s673_s0 + $0x48] sm:$0xff]  ;;  %v54_v37 = vmul.f32 %v38_v33, %v22_v32  ;;  %v25_v38 = vld [vmem:[%s673_s0 + $0x58] sm:$0xff]  ;;  %v24_v40 = vld [vmem:[%s673_s0 + $0x50] sm:$0xff] }
   0x8   :  { %v75_v28 = vsel %vm62_vm0, %v50_v21, 0.0  ;;  %v39_v31 = vld [vmem:[%s674_s1 + $0x48] sm:$0xff]  ;;  %v84_v34 = vsel %vm62_vm0, %v53_v27, 0.0  ;;  %v41_v39 = vld [vmem:[%s674_s1 + $0x58] sm:$0xff]  ;;  %v40_v41 = vld [vmem:[%s674_s1 + $0x50] sm:$0xff] }
   0x9   :  { %v78_v26 = vsel %vm62_vm0, %v51_v19, 0.0  ;;  %v55_v35 = vmul.f32 %v39_v31, %v23_v30  ;;  %v81_v36 = vsel %vm62_vm0, %v52_v29, 0.0  ;;  %v57_v43 = vmul.f32 %v41_v39, %v25_v38  ;;  %v27_v46 = vld [vmem:[%s673_s0 + $0x68] sm:$0xff]  ;;  %v26_v48 = vld [vmem:[%s673_s0 + $0x60] sm:$0xff]  ;;  %v29_v54 = vld [vmem:[%s673_s0 + $0x78] sm:$0xff] }
   0xa   :  { %73 = vadd.xlane.f32.xlu1 %v72_v18  ;;  %67 = vadd.xlane.f32.xlu0 %v66_v20  ;;  %v87_v44 = vsel %vm62_vm0, %v54_v37, 0.0  ;;  %v56_v45 = vmul.f32 %v40_v41, %v24_v40  ;;  %v43_v47 = vld [vmem:[%s674_s1 + $0x68] sm:$0xff]  ;;  %v42_v49 = vld [vmem:[%s674_s1 + $0x60] sm:$0xff]  ;;  %v45_v55 = vld [vmem:[%s674_s1 + $0x78] sm:$0xff] }
   0xb   :  { %v90_v42 = vsel %vm62_vm0, %v55_v35, 0.0  ;;  %v96_v50 = vsel %vm62_vm0, %v57_v43, 0.0  ;;  %v59_v51 = vmul.f32 %v43_v47, %v27_v46  ;;  %v58_v53 = vmul.f32 %v42_v49, %v26_v48  ;;  %v28_v56 = vld [vmem:[%s673_s0 + $0x70] sm:$0xff]  ;;  %v111_v0 = vld [vmem:[%s675_s2] sm:$0xff]  ;;  %v120_v27 = vld [vmem:[%s675_s2 + $0x48] sm:$0xff] }
   0xc   :  { %v93_v52 = vsel %vm62_vm0, %v56_v45, 0.0  ;;  %v44_v57 = vld [vmem:[%s674_s1 + $0x70] sm:$0xff]  ;;  %v61_v59 = vmul.f32 %v45_v55, %v29_v54  ;;  %v119_v1 = vld [vmem:[%s675_s2 + $0x40] sm:$0xff]  ;;  %357 = vmatprep.mubr.f32.mxu0 %v111_v0  ;;  %v114_v30 = vld [vmem:[%s675_s2 + $0x18] sm:$0xff] }
   0xd   :  { %v102_v58 = vsel %vm62_vm0, %v59_v51, 0.0  ;;  %v99_v60 = vsel %vm62_vm0, %v58_v53, 0.0  ;;  %v60_v61 = vmul.f32 %v44_v57, %v28_v56  ;;  %369 = vmatprep.mubr.f32.mxu1 %v119_v1  ;;  %v121_v29 = vld [vmem:[%s675_s2 + $0x50] sm:$0xff]  ;;  %v122_v31 = vld [vmem:[%s675_s2 + $0x58] sm:$0xff]  ;;  %v115_v32 = vld [vmem:[%s675_s2 + $0x20] sm:$0xff] }
   0xe   :  { %79 = vadd.xlane.f32.xlu1 %v78_v26  ;;  %76 = vadd.xlane.f32.xlu0 %v75_v28  ;;  %v108_v62 = vsel %vm62_vm0, %v61_v59, 0.0  ;;  %v112_v26 = vld [vmem:[%s675_s2 + $0x8] sm:$0xff]  ;;  %v113_v28 = vld [vmem:[%s675_s2 + $0x10] sm:$0xff]  ;;  %v123_v33 = vld [vmem:[%s675_s2 + $0x60] sm:$0xff] }
   0xf   :  { %v105_v63 = vsel %vm62_vm0, %v60_v61, 0.0  ;;  %v124_v35 = vld [vmem:[%s675_s2 + $0x68] sm:$0xff]  ;;  %v125_v37 = vld [vmem:[%s675_s2 + $0x70] sm:$0xff]  ;;  %v118_v38 = vld [vmem:[%s675_s2 + $0x38] sm:$0xff] }
  0x10   :  { %v126_v39 = vld [vmem:[%s675_s2 + $0x78] sm:$0xff] }
  0x12   :  { %85 = vadd.xlane.f32.xlu1 %v84_v34  ;;  %82 = vadd.xlane.f32.xlu0 %v81_v36  ;;  %v116_v34 = vld [vmem:[%s675_s2 + $0x28] sm:$0xff]  ;;  %v117_v36 = vld [vmem:[%s675_s2 + $0x30] sm:$0xff] }
  0x16   :  { %91 = vadd.xlane.f32.xlu1 %v90_v42  ;;  %88 = vadd.xlane.f32.xlu0 %v87_v44 }
  0x1a   :  { %97 = vadd.xlane.f32.xlu1 %v96_v50  ;;  %94 = vadd.xlane.f32.xlu0 %v93_v52 }
  0x1e   :  { %103 = vadd.xlane.f32.xlu1 %v102_v58  ;;  %100 = vadd.xlane.f32.xlu0 %v99_v60 }
  0x22   :  { %109 = vadd.xlane.f32.xlu1 %v108_v62  ;;  %106 = vadd.xlane.f32.xlu0 %v105_v63 }
  0x93   :  { %v71_v2 = vpop.xlane.xlu1 %70  ;;  %v65_v3 = vpop.xlane.xlu0 %64 }
  0x97   :  { %v74_v4 = vpop.xlane.xlu1 %73  ;;  %v68_v5 = vpop.xlane.xlu0 %67 }
  0x98   :  { %v381_v6 = vpack.c.bf16 %v68_v5, %v65_v3  ;;  %v385_v7 = vpack.c.bf16 %v74_v4, %v71_v2 }
  0x9a   :  { %382 = vmatprep.subr.bf16.mxu0 %v381_v6  ;;  %413 = vmatprep.subr.bf16.mxu1 %v381_v6 }
  0x9b   :  { %v80_v8 = vpop.xlane.xlu1 %79  ;;  %384 = vmatpush3.bf16.msra.mxu0 %v381_v6  ;;  %421 = vmatpush3.bf16.msra.mxu1 %v381_v6  ;;  %v77_v9 = vpop.xlane.xlu0 %76 }
  0x9c   :  { %386 = vmatprep.subr.bf16.mxu0 %v385_v7  ;;  %414 = vmatprep.subr.bf16.mxu1 %v385_v7  ;;  %v389_v10 = vpack.c.bf16 %v80_v8, %v77_v9 }
  0x9f   :  { %v86_v11 = vpop.xlane.xlu1 %85  ;;  %388 = vmatpush3.bf16.msra.mxu0 %v385_v7  ;;  %422 = vmatpush3.bf16.msra.mxu1 %v385_v7  ;;  %v83_v12 = vpop.xlane.xlu0 %82 }
  0xa0   :  { %390 = vmatprep.subr.bf16.mxu0 %v389_v10  ;;  %415 = vmatprep.subr.bf16.mxu1 %v389_v10  ;;  %v393_v13 = vpack.c.bf16 %v86_v11, %v83_v12 }
  0xa3   :  { %v92_v14 = vpop.xlane.xlu1 %91  ;;  %392 = vmatpush3.bf16.msra.mxu0 %v389_v10  ;;  %423 = vmatpush3.bf16.msra.mxu1 %v389_v10  ;;  %v89_v15 = vpop.xlane.xlu0 %88 }
  0xa4   :  { %394 = vmatprep.subr.bf16.mxu0 %v393_v13  ;;  %416 = vmatprep.subr.bf16.mxu1 %v393_v13  ;;  %v397_v16 = vpack.c.bf16 %v92_v14, %v89_v15 }
  0xa7   :  { %v98_v17 = vpop.xlane.xlu1 %97  ;;  %396 = vmatpush3.bf16.msra.mxu0 %v393_v13  ;;  %424 = vmatpush3.bf16.msra.mxu1 %v393_v13  ;;  %v95_v18 = vpop.xlane.xlu0 %94 }
  0xa8   :  { %398 = vmatprep.subr.bf16.mxu0 %v397_v16  ;;  %417 = vmatprep.subr.bf16.mxu1 %v397_v16  ;;  %v401_v19 = vpack.c.bf16 %v98_v17, %v95_v18 }
  0xab   :  { %v104_v20 = vpop.xlane.xlu1 %103  ;;  %400 = vmatpush3.bf16.msra.mxu0 %v397_v16  ;;  %425 = vmatpush3.bf16.msra.mxu1 %v397_v16  ;;  %v101_v21 = vpop.xlane.xlu0 %100 }
  0xac   :  { %402 = vmatprep.subr.bf16.mxu0 %v401_v19  ;;  %418 = vmatprep.subr.bf16.mxu1 %v401_v19  ;;  %v405_v22 = vpack.c.bf16 %v104_v20, %v101_v21 }
  0xaf   :  { %v110_v23 = vpop.xlane.xlu1 %109  ;;  %404 = vmatpush3.bf16.msra.mxu0 %v401_v19  ;;  %426 = vmatpush3.bf16.msra.mxu1 %v401_v19  ;;  %v107_v24 = vpop.xlane.xlu0 %106 }
  0xb0   :  { %406 = vmatprep.subr.bf16.mxu0 %v405_v22  ;;  %419 = vmatprep.subr.bf16.mxu1 %v405_v22  ;;  %v409_v25 = vpack.c.bf16 %v110_v23, %v107_v24 }
  0xb3   :  { %408 = vmatpush3.bf16.msra.mxu0 %v405_v22  ;;  %427 = vmatpush3.bf16.msra.mxu1 %v405_v22 }
  0xb4   :  { %410 = vmatprep.subr.bf16.mxu0 %v409_v25  ;;  %420 = vmatprep.subr.bf16.mxu1 %v409_v25 }
  0xb7   :  { %412 = vmatpush3.bf16.msra.mxu0 %v409_v25  ;;  %428 = vmatpush3.bf16.msra.mxu1 %v409_v25 }
  0xba   :  { %358 = vmatmul.mubr.f32.vlgmr.msra.gmra.mrb[0].mxu0 %v112_v26  ;;  %370 = vmatmul.mubr.f32.vlgmr.msra.gmra.mrb[0].mxu1 %v120_v27 }
  0xbb   :  { %360 = vmatprep.mubr.f32.mxu0 %v113_v28  ;;  %372 = vmatprep.mubr.f32.mxu1 %v121_v29 }
  0xbe   :  { %361 = vmatmul.mubr.f32.gmra.mrb[2].mxu0 %v114_v30  ;;  %373 = vmatmul.mubr.f32.gmra.mrb[2].mxu1 %v122_v31 }
  0xbf   :  { %363 = vmatprep.mubr.f32.mxu0 %v115_v32  ;;  %375 = vmatprep.mubr.f32.mxu1 %v123_v33 }
  0xc2   :  { %364 = vmatmul.mubr.f32.gmra.mrb[4].mxu0 %v116_v34  ;;  %376 = vmatmul.mubr.f32.gmra.mrb[4].mxu1 %v124_v35 }
  0xc3   :  { %366 = vmatprep.mubr.f32.mxu0 %v117_v36  ;;  %378 = vmatprep.mubr.f32.mxu1 %v125_v37 }
  0xc6   :  { %367 = vmatmul.mubr.f32.gmra.mrb[6].mxu0 %v118_v38  ;;  %379 = vmatmul.mubr.f32.gmra.mrb[6].mxu1 %v126_v39 }
 0x18d   :  { %v359_v40 = vpop.f32.mrb[0].mxu0  ;;  %v371_v41 = vpop.f32.mrb[0].mxu1 }
 0x18e   :  { %274 = vst.msk [vmem:[%s676_s3 + $0x8] sm:$0xff] %vm272_vm1, %v359_v40  ;;  %282 = vst.msk [vmem:[%s676_s3 + $0x48] sm:$0xff] %vm272_vm1, %v371_v41  ;;  %v193_v42 = vpop.f32.mrb[1].mxu0  ;;  %v233_v43 = vpop.f32.mrb[1].mxu1 }
 0x18f   :  { %273 = vst.msk [vmem:[%s676_s3] sm:$0xff] %vm272_vm1, %v193_v42  ;;  %281 = vst.msk [vmem:[%s676_s3 + $0x40] sm:$0xff] %vm272_vm1, %v233_v43 }
 0x191   :  { %v362_v44 = vpop.f32.mrb[2].mxu0  ;;  %v374_v45 = vpop.f32.mrb[2].mxu1 }
 0x192   :  { %276 = vst.msk [vmem:[%s676_s3 + $0x18] sm:$0xff] %vm272_vm1, %v362_v44  ;;  %284 = vst.msk [vmem:[%s676_s3 + $0x58] sm:$0xff] %vm272_vm1, %v374_v45  ;;  %v203_v46 = vpop.f32.mrb[3].mxu0  ;;  %v243_v47 = vpop.f32.mrb[3].mxu1 }
 0x193   :  { %275 = vst.msk [vmem:[%s676_s3 + $0x10] sm:$0xff] %vm272_vm1, %v203_v46  ;;  %283 = vst.msk [vmem:[%s676_s3 + $0x50] sm:$0xff] %vm272_vm1, %v243_v47 }
 0x195   :  { %v365_v48 = vpop.f32.mrb[4].mxu0  ;;  %v377_v49 = vpop.f32.mrb[4].mxu1 }
 0x196   :  { %278 = vst.msk [vmem:[%s676_s3 + $0x28] sm:$0xff] %vm272_vm1, %v365_v48  ;;  %286 = vst.msk [vmem:[%s676_s3 + $0x68] sm:$0xff] %vm272_vm1, %v377_v49  ;;  %v213_v50 = vpop.f32.mrb[5].mxu0  ;;  %v253_v51 = vpop.f32.mrb[5].mxu1 }
 0x197   :  { %277 = vst.msk [vmem:[%s676_s3 + $0x20] sm:$0xff] %vm272_vm1, %v213_v50  ;;  %285 = vst.msk [vmem:[%s676_s3 + $0x60] sm:$0xff] %vm272_vm1, %v253_v51 }
 0x199   :  { %v368_v52 = vpop.f32.mrb[6].mxu0  ;;  %v380_v53 = vpop.f32.mrb[6].mxu1 }
 0x19a   :  { %280 = vst.msk [vmem:[%s676_s3 + $0x38] sm:$0xff] %vm272_vm1, %v368_v52  ;;  %288 = vst.msk [vmem:[%s676_s3 + $0x78] sm:$0xff] %vm272_vm1, %v380_v53  ;;  %v223_v54 = vpop.f32.mrb[7].mxu0  ;;  %v263_v55 = vpop.f32.mrb[7].mxu1 }
 0x19b   :  { %279 = vst.msk [vmem:[%s676_s3 + $0x30] sm:$0xff] %vm272_vm1, %v223_v54  ;;  %287 = vst.msk [vmem:[%s676_s3 + $0x70] sm:$0xff] %vm272_vm1, %v263_v55 }

</bundles_post_ra>
